<compile_context>
chip_gen: v7x
topology: tpu7x:2x2x1
jax: 0.10.0
libtpu: 0.0.40
codegen_flags: <defaults>
</compile_context>

<pallas_src>
import functools

import jax
import jax.numpy as jnp
from jax.experimental import pallas as pl
from jax.experimental.pallas import tpu as pltpu


def _round_up(x, m):
    return ((x + m - 1) // m) * m


def _linear_kernel(x_ref, w_ref, b_ref, o_ref, *, compute_dtype):
    # x_ref: (tm, F), w_ref: (F, tn), b_ref: (1, tn) f32, o_ref: (tm, tn)
    x = x_ref[...]
    if compute_dtype is not None and x.dtype != compute_dtype:
        x = x.astype(compute_dtype)          # fused cast: no extra HBM pass over X
    acc = jnp.dot(x, w_ref[...], preferred_element_type=jnp.float32)
    o_ref[...] = (acc + b_ref[...]).astype(o_ref.dtype)


# Conservative per-core VMEM budget for the pipelined buffers: fits v5e's 16 MiB
# scoped default once vmem_limit_bytes is raised, and leaves headroom on v7x's
# 64 MiB physical VMEM even with both TensorCores holding their own copies.
_VMEM_BUDGET = 32 * 1024 * 1024


@functools.partial(jax.jit, static_argnames=("tile_m", "compute_dtype", "out_dtype"))
def vit_linear_projection(x, w, b, *, tile_m=512, compute_dtype=None, out_dtype=None):
    """x: (B, N, C, P, P); w: (F, D) with F = C*P*P; b: (D,). Returns (B, N, D).

    compute_dtype: e.g. jnp.bfloat16 -> MXU runs in bf16 with f32 accumulation
    (cast of X is fused into the kernel; W is cast once in the wrapper).
    out_dtype:     output dtype (default: x.dtype); pass bf16 to halve writeback.
    """
    B, N = x.shape[0], x.shape[1]
    F = x.shape[2] * x.shape[3] * x.shape[4]
    D = w.shape[1]
    M = B * N
    out_dtype = x.dtype if out_dtype is None else out_dtype

    # No wrapper-side cast / row padding of X (largest tensor): zero extra HBM passes.
    x2 = x.reshape(M, F)
    if compute_dtype is not None:
        w = w.astype(compute_dtype)          # W is small: one-time cast is cheap
    b2 = b.astype(jnp.float32).reshape(1, D)

    # Lane-dense output: pad d_model to a multiple of 128 (avoids masked vst.msk).
    D_pad = _round_up(D, 128)
    if D_pad != D:
        w = jnp.pad(w, ((0, 0), (0, D_pad - D)))
        b2 = jnp.pad(b2, ((0, 0), (0, D_pad - D)))

    x_bytes = jnp.dtype(x2.dtype).itemsize
    w_bytes = jnp.dtype(w.dtype).itemsize
    o_bytes = jnp.dtype(out_dtype).itemsize

    # Sublane quantum for the row tile (8 for 32-bit, 16 for 16-bit, 32 for 8-bit).
    sub = max(8, 32 // x_bytes)
    tm = min(_round_up(tile_m, sub), _round_up(M, sub))

    def footprint(tm_, tn_):
        # Double-buffered X / W / bias / out tiles (bias row pads to 8 sublanes).
        return 2 * (tm_ * F * x_bytes + F * tn_ * w_bytes
                    + 8 * tn_ * 4 + tm_ * tn_ * o_bytes)

    # Prefer full weight residency: W (and bias) fetched from HBM exactly once.
    w_resident = footprint(sub, D_pad) <= _VMEM_BUDGET
    if w_resident:
        tn = D_pad
    else:
        # Huge F*D fallback: tile d_model; columns become the OUTER grid axis so
        # every W column tile is still DMAed only once (X is re-streamed instead).
        tn = 256 if D_pad % 256 == 0 else 128

    # Shrink the row tile until the double-buffered footprint fits the budget.
    while footprint(tm, tn) > _VMEM_BUDGET and tm > sub:
        tm = _round_up(max(sub, tm // 2), sub)

    n_rows = pl.cdiv(M, tm)      # ragged last tile handled by Pallas block masking
    n_cols = D_pad // tn

    vmem_limit = min(max(int(footprint(tm, tn) * 1.25) + (2 << 20), 4 << 20), 56 << 20)

    cost = pl.CostEstimate(
        flops=2 * M * F * D_pad,
        transcendentals=0,
        bytes_accessed=(x_bytes * M * F * (1 if w_resident else n_cols)
                        + w_bytes * F * D_pad
                        + 4 * D_pad
                        + o_bytes * M * D_pad),
    )

    kernel = functools.partial(_linear_kernel, compute_dtype=compute_dtype)

    if w_resident:
        grid = (n_rows,)
        in_specs = [
            pl.BlockSpec((tm, F), lambda i: (i, 0)),       # X row tile (streamed)
            pl.BlockSpec((F, D_pad), lambda i: (0, 0)),    # W resident: DMAed once
            pl.BlockSpec((1, D_pad), lambda i: (0, 0)),    # bias resident
        ]
        out_specs = pl.BlockSpec((tm, D_pad), lambda i: (i, 0))
        dims = ("parallel",)
    else:
        grid = (n_cols, n_rows)  # columns OUTER, rows inner -> W tile reused across rows
        in_specs = [
            pl.BlockSpec((tm, F), lambda j, i: (i, 0)),
            pl.BlockSpec((F, tn), lambda j, i: (0, j)),
            pl.BlockSpec((1, tn), lambda j, i: (0, j)),
        ]
        out_specs = pl.BlockSpec((tm, tn), lambda j, i: (i, j))
        dims = ("parallel", "parallel")

    y2 = pl.pallas_call(
        kernel,
        out_shape=jax.ShapeDtypeStruct((M, D_pad), out_dtype),
        grid_spec=pltpu.PrefetchScalarGridSpec(
            num_scalar_prefetch=0,
            grid=grid,
            in_specs=in_specs,
            out_specs=out_specs,
        ),
        compiler_params=pltpu.CompilerParams(
            dimension_semantics=dims,
            vmem_limit_bytes=vmem_limit,
        ),
        cost_estimate=cost,
    )(x2, w, b2)

    return y2[:, :D].reshape(B, N, D)


def init_linear_params(key, in_features, out_features, dtype=jnp.float32):
    """Matches nn.Linear default init: U(-1/sqrt(fan_in), 1/sqrt(fan_in))."""
    kw, kb = jax.random.split(key)
    bound = 1.0 / jnp.sqrt(jnp.asarray(in_features, dtype))
    # PyTorch stores weight as (out, in); we keep it pre-transposed as (in, out).
    w = jax.random.uniform(kw, (in_features, out_features), dtype, -bound, bound)
    b = jax.random.uniform(kb, (out_features,), dtype, -bound, bound)
    return w, b


if __name__ == "__main__":
    # Small shapes consistent with the module: in_channels=4, patch_size=4, d_model=32
    B, N = 2, 8            # batch, number of patches
    C, P, D = 4, 4, 32     # in_channels, patch_size, d_model
    F = C * P * P          # 64 flattened patch features

    key = jax.random.PRNGKey(0)
    kx, kp = jax.random.split(key)
    x = jax.random.normal(kx, (B, N, C, P, P), dtype=jnp.float32)
    w, b = init_linear_params(kp, F, D)

    # f32 path.
    y = jax.block_until_ready(vit_linear_projection(x, w, b))

    # Reference (same math as nn.Linear on the flattened view).
    y_ref = x.reshape(B, N, F) @ w + b
    assert y.shape == (B, N, D)
    assert jnp.allclose(y, y_ref, atol=1e-5, rtol=1e-5)

    # bf16-compute path (cast fused in-kernel; recommended on v6e/v7x).
    y_bf16 = jax.block_until_ready(
        vit_linear_projection(x, w, b, compute_dtype=jnp.bfloat16)
    )
    assert y_bf16.shape == (B, N, D)
    assert jnp.allclose(y_bf16, y_ref, atol=5e-2, rtol=5e-2)

    # bf16 output path (halved writeback for bf16 consumers).
    y_bo = jax.block_until_ready(
        vit_linear_projection(x, w, b, compute_dtype=jnp.bfloat16,
                              out_dtype=jnp.bfloat16)
    )
    assert y_bo.dtype == jnp.bfloat16
    assert jnp.allclose(y_bo.astype(jnp.float32), y_ref, atol=5e-2, rtol=5e-2)

    print("KERNEL_OK")
</pallas_src>

<mosaic_0001>
module attributes {stable_mosaic.version = 11 : i64} {
  func.func @_linear_kernel(%arg0: i32, %arg1: memref<16x64xf32, #tpu.memory_space<vmem>>, %arg2: memref<64x128xf32, #tpu.memory_space<vmem>>, %arg3: memref<1x128xf32, #tpu.memory_space<vmem>>, %arg4: memref<16x128xf32, #tpu.memory_space<vmem>>) attributes {dimension_semantics = [#tpu.dimension_semantics<parallel>], iteration_bounds = array<i64: 1>, scalar_prefetch = 0 : i64, scratch_operands = 0 : i64, tpu.core_type = #tpu.core_type<tc>, window_params = [{transform_indices = @transform_0, window_bounds = array<i64: 16, 64>}, {pipeline_mode = #tpu.pipeline_mode<synchronous>, transform_indices = @transform_1, window_bounds = array<i64: 64, 128>}, {pipeline_mode = #tpu.pipeline_mode<synchronous>, transform_indices = @transform_2, window_bounds = array<i64: 1, 128>}, {transform_indices = @transform_3, window_bounds = array<i64: 16, 128>}]} {
    %c0 = arith.constant 0 : index
    %c0_0 = arith.constant 0 : index
    %0 = vector.load %arg1[%c0, %c0_0] : memref<16x64xf32, #tpu.memory_space<vmem>>, vector<16x64xf32>
    %c0_1 = arith.constant 0 : index
    %c0_2 = arith.constant 0 : index
    %1 = vector.load %arg2[%c0_1, %c0_2] : memref<64x128xf32, #tpu.memory_space<vmem>>, vector<64x128xf32>
    %cst = arith.constant dense<0.000000e+00> : vector<16x128xf32>
    %2 = tpu.matmul %0, %1, %cst {dimension_numbers = #tpu.dot_dimension_numbers<[1], [0], [0], [1], [0, 0, 1, 1], [], []>} : vector<16x64xf32>, vector<64x128xf32>, vector<16x128xf32> -> vector<16x128xf32>
    %c0_3 = arith.constant 0 : index
    %c0_4 = arith.constant 0 : index
    %3 = vector.load %arg3[%c0_3, %c0_4] : memref<1x128xf32, #tpu.memory_space<vmem>>, vector<1x128xf32>
    %4 = vector.broadcast %3 : vector<1x128xf32> to vector<16x128xf32>
    %5 = arith.addf %2, %4 : vector<16x128xf32>
    %c0_5 = arith.constant 0 : index
    %c0_6 = arith.constant 0 : index
    %6 = vector.load %arg4[%c0_5, %c0_6] : memref<16x128xf32, #tpu.memory_space<vmem>>, vector<16x128xf32>
    tpu.vector_store %arg4[%c0_5, %c0_6], %5 {strides = array<i32>} : memref<16x128xf32, #tpu.memory_space<vmem>>, vector<16x128xf32>,
    return
  }
  func.func @transform_0(%arg0: i32) -> (i32, i32) {
    %c0_i32 = arith.constant 0 : i32
    %c0_i32_0 = arith.constant 0 : i32
    return %arg0, %c0_i32 : i32, i32
  }
  func.func @transform_1(%arg0: i32) -> (i32, i32) {
    %c0_i32 = arith.constant 0 : i32
    %c0_i32_0 = arith.constant 0 : i32
    %c0_i32_1 = arith.constant 0 : i32
    return %c0_i32, %c0_i32_0 : i32, i32
  }
  func.func @transform_2(%arg0: i32) -> (i32, i32) {
    %c0_i32 = arith.constant 0 : i32
    %c0_i32_0 = arith.constant 0 : i32
    %c0_i32_1 = arith.constant 0 : i32
    return %c0_i32, %c0_i32_0 : i32, i32
  }
  func.func @transform_3(%arg0: i32) -> (i32, i32) {
    %c0_i32 = arith.constant 0 : i32
    %c0_i32_0 = arith.constant 0 : i32
    return %arg0, %c0_i32 : i32, i32
  }
}

</mosaic_0001>

<bundles_post_ra>
// kernel: vit_linear_projection.1
= control target key start
LH: loop header
LB: loop body
LE: loop exit
PB: predicated region body
PF: predicated region fallthrough
CT: control target
= control target key end

     0   :  { %vm31_vm0 = vcmask 523264   ;;  %s228_s1 = inlined_call_operand.vmem [shape: f32[64,128], index: 1, kind: input, shape index: {}]   ;;  %s229_s0 = inlined_call_operand.vmem [shape: f32[16,64], index: 0, kind: input, shape index: {}]   ;;  %s230_s2 = inlined_call_operand.vmem [shape: f32[1,128], index: 2, kind: input, shape index: {}]   ;;  %s231_s3 = inlined_call_operand.vmem [shape: f32[16,128], index: 3, kind: output, shape index: {}]  }
   0x1   :  { %v16_v0 = vld [vmem:[%s228_s1] sm:$0xff]  ;;  %v17_v1 = vld [vmem:[%s228_s1 + $0x8] sm:$0xff]  ;;  %v18_v2 = vld [vmem:[%s228_s1 + $0x10] sm:$0xff] }
   0x2   :  { %v151_v3 = vpack.c.bf16 %v17_v1, %v16_v0  ;;  %v19_v4 = vld [vmem:[%s228_s1 + $0x18] sm:$0xff]  ;;  %v20_v6 = vld [vmem:[%s228_s1 + $0x20] sm:$0xff]  ;;  %v21_v7 = vld [vmem:[%s228_s1 + $0x28] sm:$0xff] }
   0x3   :  { %v155_v5 = vpack.c.bf16 %v19_v4, %v18_v2  ;;  %v14_v8 = vld [vmem:[%s229_s0] sm:$0xff]  ;;  %v159_v9 = vpack.c.bf16 %v21_v7, %v20_v6  ;;  %v22_v10 = vld [vmem:[%s228_s1 + $0x30] sm:$0xff]  ;;  %v23_v11 = vld [vmem:[%s228_s1 + $0x38] sm:$0xff] }
   0x4   :  { %152 = vmatprep.subr.bf16.mxu0 %v151_v3  ;;  %148 = vmatprep.mubr.msk.f32.mxu0 %vm31_vm0, %v14_v8  ;;  %v163_v12 = vpack.c.bf16 %v23_v11, %v22_v10  ;;  %v15_v13 = vld [vmem:[%s229_s0 + $0x8] sm:$0xff]  ;;  %v119_v14 = vld [vmem:[%s230_s2] ss:$0 sm:$0xff] }
   0x5   :  { %154 = vmatpush3.bf16.msra.mxu0 %v151_v3 }
   0x6   :  { %156 = vmatprep.subr.bf16.mxu0 %v155_v5 }
   0x9   :  { %158 = vmatpush3.bf16.msra.mxu0 %v155_v5 }
   0xa   :  { %160 = vmatprep.subr.bf16.mxu0 %v159_v9 }
   0xd   :  { %162 = vmatpush3.bf16.msra.mxu0 %v159_v9 }
   0xe   :  { %164 = vmatprep.subr.bf16.mxu0 %v163_v12 }
  0x11   :  { %166 = vmatpush3.bf16.msra.mxu0 %v163_v12 }
  0x14   :  { %149 = vmatmul.mubr.msk.f32.vlgmr.msra.gmra.mrb[0].mxu0 %vm31_vm0, %v15_v13 }
  0xe7   :  { %v150_v15 = vpop.f32.mrb[0].mxu0 }
  0xe8   :  { %v110_v16 = vadd.f32 %v150_v15, %v119_v14  ;;  %v104_v17 = vpop.f32.mrb[1].mxu0 }
  0xe9   :  { %v105_v18 = vadd.f32 %v119_v14, %v104_v17 }
  0xea   :  { %114 = vst [vmem:[%s231_s3 + $0x8] sm:$0xff] %v110_v16 }
  0xeb   :  { %113 = vst [vmem:[%s231_s3] sm:$0xff] %v105_v18 }

</bundles_post_ra>
